<compile_context>
chip_gen: v7x
topology: tpu7x:2x2x1
jax: 0.10.0
libtpu: 0.0.40
codegen_flags: <defaults>
</compile_context>

<pallas_src>
import math
import numpy as np
import jax
import jax.numpy as jnp
from jax import lax
from jax.experimental import pallas as pl
from jax.experimental.pallas import tpu as pltpu


def _round_up(x, m):
    return ((x + m - 1) // m) * m


def _vmem_limit_bytes():
    # ~3/4 of physical VMEM: ~48 MiB on v7x (64 MiB phys), ~96 MiB on v5e/v6e.
    try:
        phys = pltpu.get_tpu_info().vmem_capacity_bytes
    except Exception:
        phys = 64 * 1024 * 1024          # conservative (v7x-sized) fallback
    return min(int(phys * 3 // 4), 100 * 1024 * 1024)


_VMEM_LIMIT = _vmem_limit_bytes()


# ----------------------------------------------------------------------------
# Pallas kernel 1:  y = [relu]( A @ W + bias [+ residual] )
#   A: (M, K) bf16,  W: (K, Cout) bf16 (BN scale pre-folded, VMEM-resident),
#   bias: (1, Cout) f32,  residual: (M, Cout) bf16 or None.
#   K and Cout must be multiples of 128 (lane-dense); M is padded internally.
# ----------------------------------------------------------------------------
def matmul_bias_act(a, w, bias, residual=None, relu=False,
                    out_dtype=jnp.bfloat16, tm=1024):
    M, K = a.shape
    Kw, Cout = w.shape
    assert K == Kw and K % 128 == 0 and Cout % 128 == 0

    tm = min(tm, _round_up(M, 8))
    Mp = _round_up(M, tm)                      # pad rows instead of asserting
    if Mp != M:
        a = jnp.pad(a, ((0, Mp - M), (0, 0)))
        if residual is not None:
            residual = jnp.pad(residual, ((0, Mp - M), (0, 0)))

    with_res = residual is not None

    def kernel(a_ref, w_ref, b_ref, *rest):
        if with_res:
            r_ref, o_ref = rest
        else:
            (o_ref,) = rest
            r_ref = None
        # bf16 x bf16 -> f32 on the MXU; W is resident so no K loop / scratch.
        y = jnp.dot(a_ref[...], w_ref[...], preferred_element_type=jnp.float32)
        y = y + b_ref[...]
        if r_ref is not None:
            y = y + r_ref[...].astype(jnp.float32)
        if relu:
            y = jnp.maximum(y, 0.0)
        o_ref[...] = y.astype(o_ref.dtype)

    in_specs = [
        pl.BlockSpec((tm, K), lambda i: (i, 0)),        # streamed A row-tiles
        pl.BlockSpec((K, Cout), lambda i: (0, 0)),      # W resident (1 DMA)
        pl.BlockSpec((1, Cout), lambda i: (0, 0)),      # bias resident
    ]
    inputs = [a.astype(jnp.bfloat16), w.astype(jnp.bfloat16),
              bias.astype(jnp.float32)]
    if with_res:
        in_specs.append(pl.BlockSpec((tm, Cout), lambda i: (i, 0)))
        inputs.append(residual.astype(jnp.bfloat16))

    out = pl.pallas_call(
        kernel,
        out_shape=jax.ShapeDtypeStruct((Mp, Cout), out_dtype),
        grid=(Mp // tm,),
        in_specs=in_specs,
        out_specs=pl.BlockSpec((tm, Cout), lambda i: (i, 0)),
        compiler_params=pltpu.CompilerParams(
            dimension_semantics=("parallel",),
            vmem_limit_bytes=_VMEM_LIMIT),
    )(*inputs)
    return out[:M]


# ----------------------------------------------------------------------------
# Pallas kernel 2: 3x3 conv (pad=1, stride=s) + folded BN + ReLU as a 9-tap
# in-kernel MXU reduction over contiguous shifted-row slices.
#   x_nhwc: (N, H, W, Cp) bf16, Cp multiple of 128
#   w9:     (9, Cp, Cout) bf16 taps (kh*3+kw), BN scale folded in (resident)
#   bias:   (1, Cout) f32
# Returns (N*Ho*Wo, Cout) in out_dtype.
# ----------------------------------------------------------------------------
def conv3x3_bn_relu(x_nhwc, w9, bias, stride, out_dtype=jnp.bfloat16):
    N, H, W, Cp = x_nhwc.shape
    Cout = w9.shape[2]
    assert Cp % 128 == 0 and Cout % 128 == 0
    s = stride
    Ho = (H - 1) // s + 1
    Wo = (W - 1) // s + 1
    q = (3 - 1) // s                       # largest tap block-offset
    Hs, Ws = Ho + q, Wo + q
    extra = 1 if q > 0 else 0              # 1 spare row keeps flat taps in-bounds
    Ha = Hs + extra

    # Spatial pad (top/left = 1), bottom/right to an exact (Ha*s, Ws*s) extent;
    # then space-to-depth so tap (kh,kw) is a contiguous block shifted by
    # (kh//s, kw//s) within channel slab (kh%s, kw%s).  Identity for stride=1.
    ph, pw = Ha * s - H - 1, Ws * s - W - 1
    xp = jnp.pad(x_nhwc, ((0, 0), (1, max(ph, 0)), (1, max(pw, 0)), (0, 0)))
    xp = xp[:, :Ha * s, :Ws * s, :]
    if s == 1:
        xs = xp
    else:
        xs = xp.reshape(N, Ha, s, Ws, s, Cp).transpose(0, 1, 3, 2, 4, 5)
        xs = xs.reshape(N, Ha, Ws, s * s * Cp)
    Cslab = xs.shape[-1]
    xflat = xs.reshape(N, Ha * Ws, Cslab)   # leading-dim reshape: free
    rows_in = Ha * Ws
    rows_out = Ho * Ws                      # kernel emits Ws cols per out row

    def kernel(x_ref, w_ref, b_ref, o_ref):
        acc = jnp.zeros((rows_out, Cout), jnp.float32)
        for kh in range(3):                 # 9 static, contiguous bf16 slices
            for kw in range(3):
                qh, rh = divmod(kh, s)
                qw, rw = divmod(kw, s)
                row0 = qh * Ws + qw
                c0 = (rh * s + rw) * Cp
                lhs = x_ref[0, row0:row0 + rows_out, c0:c0 + Cp]
                acc = acc + jnp.dot(lhs, w_ref[kh * 3 + kw],
                                    preferred_element_type=jnp.float32)
        y = jnp.maximum(acc + b_ref[...], 0.0)
        o_ref[0] = y.astype(o_ref.dtype)

    out = pl.pallas_call(
        kernel,
        out_shape=jax.ShapeDtypeStruct((N, rows_out, Cout), out_dtype),
        grid=(N,),
        in_specs=[
            # full flat image per batch element (one DMA each)
            pl.BlockSpec((1, rows_in, Cslab), lambda n: (n, 0, 0)),
            # weights + bias resident across the whole launch
            pl.BlockSpec((9, Cp, Cout), lambda n: (0, 0, 0)),
            pl.BlockSpec((1, Cout), lambda n: (0, 0)),
        ],
        out_specs=pl.BlockSpec((1, rows_out, Cout), lambda n: (n, 0, 0)),
        compiler_params=pltpu.CompilerParams(
            dimension_semantics=("parallel",),
            vmem_limit_bytes=_VMEM_LIMIT),
    )(xflat.astype(jnp.bfloat16), w9.astype(jnp.bfloat16),
      bias.astype(jnp.float32))

    # Crop the (Ws - Wo) garbage columns per output row.
    out = out.reshape(N, Ho, Ws, Cout)[:, :, :Wo, :]
    return out.reshape(N * Ho * Wo, Cout)


# ----------------------------------------------------------------------------
# Host-side weight prep: fold BN (inference) into weights, pad to 128 lanes.
# ----------------------------------------------------------------------------
def fold_bn(bn, eps=1e-5):
    gamma, beta, mean, var = bn
    scale = gamma / jnp.sqrt(var + eps)
    bias = beta - mean * scale
    return scale, bias


def prep_1x1(w, bn, cin_p, cout_p):
    """(Cout,Cin,1,1) conv + BN -> ((Cin_p,Cout_p) bf16, (1,Cout_p) f32)."""
    cout, cin = w.shape[0], w.shape[1]
    scale, bias = fold_bn(bn)
    wm = jnp.transpose(w[:, :, 0, 0], (1, 0)) * scale[None, :]      # (Cin,Cout)
    wm = jnp.pad(wm, ((0, cin_p - cin), (0, cout_p - cout)))
    b = jnp.pad(bias, (0, cout_p - cout))[None, :]
    return wm.astype(jnp.bfloat16), b.astype(jnp.float32)


def prep_3x3(w, bn, cin_p, cout_p):
    """(Cout,Cin,3,3) conv + BN -> ((9,Cin_p,Cout_p) bf16, (1,Cout_p) f32)."""
    cout, cin = w.shape[0], w.shape[1]
    scale, bias = fold_bn(bn)
    wm = jnp.transpose(w, (2, 3, 1, 0)) * scale[None, None, None, :]  # (3,3,Ci,Co)
    wm = wm.reshape(9, cin, cout)
    wm = jnp.pad(wm, ((0, 0), (0, cin_p - cin), (0, cout_p - cout)))
    b = jnp.pad(bias, (0, cout_p - cout))[None, :]
    return wm.astype(jnp.bfloat16), b.astype(jnp.float32)


def pad_channels(x, c_p):
    c = x.shape[-1]
    if c == c_p:
        return x
    return jnp.pad(x, ((0, 0),) * (x.ndim - 1) + ((0, c_p - c),))


# ----------------------------------------------------------------------------
# Bottleneck forward (Pallas-backed)
# ----------------------------------------------------------------------------
def bottleneck_forward(x_nchw, params, stride):
    p = params
    x = jnp.transpose(x_nchw, (0, 2, 3, 1))              # NCHW -> NHWC
    N, H, W, Cin = x.shape
    planes = p["w1"].shape[0]
    cexp = p["w3"].shape[0]

    cin_p = _round_up(Cin, 128)
    cpl_p = _round_up(planes, 128)
    cexp_p = _round_up(cexp, 128)

    xb = pad_channels(x, cin_p).astype(jnp.bfloat16)     # lane-dense bf16

    # conv1 (1x1) + bn1 + relu
    w1m, b1 = prep_1x1(p["w1"], p["bn1"], cin_p, cpl_p)
    out1 = matmul_bias_act(xb.reshape(N * H * W, cin_p), w1m, b1, relu=True)
    out1 = out1.reshape(N, H, W, cpl_p)

    # conv2 (3x3, stride, pad=1) + bn2 + relu  (9-tap in-kernel reduction)
    w2m, b2 = prep_3x3(p["w2"], p["bn2"], cpl_p, cpl_p)
    out2 = conv3x3_bn_relu(out1, w2m, b2, stride)        # (N*Ho*Wo, cpl_p)
    Ho = (H - 1) // stride + 1
    Wo = (W - 1) // stride + 1

    # shortcut: 1x1 strided conv + bn (projection), or identity
    if stride != 1 or Cin != cexp:
        wsm, bs = prep_1x1(p["ws"], p["bns"], cin_p, cexp_p)
        xsub = xb[:, ::stride, ::stride, :].reshape(N * Ho * Wo, cin_p)
        sc = matmul_bias_act(xsub, wsm, bs, relu=False)
    else:
        sc = xb.reshape(N * Ho * Wo, cexp_p)             # cin_p == cexp_p here

    # conv3 (1x1) + bn3 + residual add + relu, fused in one kernel epilogue.
    # bf16 output: halves store / transpose traffic on the block's largest tensor.
    w3m, b3 = prep_1x1(p["w3"], p["bn3"], cpl_p, cexp_p)
    out3 = matmul_bias_act(out2, w3m, b3, residual=sc, relu=True)

    out = out3[:, :cexp].reshape(N, Ho, Wo, cexp)
    return jnp.transpose(out, (0, 3, 1, 2)).astype(jnp.float32)   # NHWC -> NCHW


# ----------------------------------------------------------------------------
# Pure-JAX (lax.conv, f32) reference for correctness check
# ----------------------------------------------------------------------------
def reference_forward(x, params, stride):
    p = params
    dn = ("NCHW", "OIHW", "NCHW")

    def conv(inp, w, s, pad):
        return lax.conv_general_dilated(
            inp, w, (s, s), pad, dimension_numbers=dn,
            precision=lax.Precision.HIGHEST)

    def bn(inp, stats):
        gamma, beta, mean, var = stats
        scale = gamma / jnp.sqrt(var + 1e-5)
        bias = beta - mean * scale
        return inp * scale[None, :, None, None] + bias[None, :, None, None]

    out = jax.nn.relu(bn(conv(x, p["w1"], 1, "VALID"), p["bn1"]))
    out = jax.nn.relu(bn(conv(out, p["w2"], stride, [(1, 1), (1, 1)]), p["bn2"]))
    out = bn(conv(out, p["w3"], 1, "VALID"), p["bn3"])
    Cin, Cexp = x.shape[1], p["w3"].shape[0]
    if stride != 1 or Cin != Cexp:
        sc = bn(conv(x, p["ws"], stride, "VALID"), p["bns"])
    else:
        sc = x
    return jax.nn.relu(out + sc)


# ----------------------------------------------------------------------------
# Deterministic parameter init (shapes from Bottleneck.__init__)
# ----------------------------------------------------------------------------
def init_params(key, in_planes, planes, stride):
    expansion = 4
    keys = jax.random.split(key, 16)

    def conv_w(k, cout, cin, ks):
        fan = cin * ks * ks
        return (jax.random.normal(k, (cout, cin, ks, ks), jnp.float32)
                / math.sqrt(fan))

    def bn_stats(k, c):
        k1, k2, k3, k4 = jax.random.split(k, 4)
        gamma = 1.0 + 0.1 * jax.random.normal(k1, (c,), jnp.float32)
        beta = 0.1 * jax.random.normal(k2, (c,), jnp.float32)
        mean = 0.1 * jax.random.normal(k3, (c,), jnp.float32)
        var = 1.0 + 0.1 * jnp.abs(jax.random.normal(k4, (c,), jnp.float32))
        return (gamma, beta, mean, var)

    params = {
        "w1": conv_w(keys[0], planes, in_planes, 1),
        "bn1": bn_stats(keys[1], planes),
        "w2": conv_w(keys[2], planes, planes, 3),
        "bn2": bn_stats(keys[3], planes),
        "w3": conv_w(keys[4], expansion * planes, planes, 1),
        "bn3": bn_stats(keys[5], expansion * planes),
    }
    if stride != 1 or in_planes != expansion * planes:
        params["ws"] = conv_w(keys[6], expansion * planes, in_planes, 1)
        params["bns"] = bn_stats(keys[7], expansion * planes)
    return params


if __name__ == "__main__":
    key = jax.random.PRNGKey(0)

    # Direct multi-M-tile check of the matmul kernel (M padding + >1 row block).
    k1, k2, k3, key = jax.random.split(key, 4)
    a = jax.random.normal(k1, (80, 128), jnp.float32)
    w = jax.random.normal(k2, (128, 256), jnp.float32) / 16.0
    b = 0.1 * jax.random.normal(k3, (1, 256), jnp.float32)
    y = jax.block_until_ready(matmul_bias_act(a, w, b, relu=True, tm=32))
    y_ref = jnp.maximum(a @ w + b, 0.0)
    np.testing.assert_allclose(np.asarray(y.astype(jnp.float32)),
                               np.asarray(y_ref), rtol=5e-2, atol=5e-2)

    # Full Bottleneck forward vs. lax.conv reference: both strides, projection
    # and identity shortcuts, and a multi-lane-group Cout path.
    configs = [
        # (in_planes, planes, stride, H, W, N)
        (4, 4, 2, 16, 16, 2),    # stride-2, projection shortcut
        (16, 4, 1, 8, 8, 2),     # stride-1, identity shortcut
        (64, 64, 1, 8, 8, 1),    # stride-1, channel-change projection (Cout=256)
    ]
    for (in_planes, planes, stride, H, W, N) in configs:
        k_x, k_p, key = jax.random.split(key, 3)
        x = jax.random.normal(k_x, (N, in_planes, H, W), jnp.float32)  # NCHW
        params = init_params(k_p, in_planes, planes, stride)

        fwd = jax.jit(bottleneck_forward, static_argnums=(2,))
        out = jax.block_until_ready(fwd(x, params, stride))
        ref = jax.block_until_ready(reference_forward(x, params, stride))

        assert out.shape == ref.shape, (out.shape, ref.shape)
        # bf16 MXU operands + bf16 intermediates / output vs. f32 HIGHEST ref.
        np.testing.assert_allclose(np.asarray(out), np.asarray(ref),
                                   rtol=5e-2, atol=5e-2)

    print("KERNEL_OK")
</pallas_src>

<mosaic_0001>
module attributes {stable_mosaic.version = 11 : i64} {
  func.func @kernel(%arg0: i32, %arg1: memref<32x128xbf16, #tpu.memory_space<vmem>>, %arg2: memref<128x256xbf16, #tpu.memory_space<vmem>>, %arg3: memref<1x256xf32, #tpu.memory_space<vmem>>, %arg4: memref<32x256xbf16, #tpu.memory_space<vmem>>) attributes {dimension_semantics = [#tpu.dimension_semantics<parallel>], iteration_bounds = array<i64: 3>, scalar_prefetch = 0 : i64, scratch_operands = 0 : i64, tpu.core_type = #tpu.core_type<tc>, window_params = [{transform_indices = @transform_0, window_bounds = array<i64: 32, 128>}, {pipeline_mode = #tpu.pipeline_mode<synchronous>, transform_indices = @transform_1, window_bounds = array<i64: 128, 256>}, {pipeline_mode = #tpu.pipeline_mode<synchronous>, transform_indices = @transform_2, window_bounds = array<i64: 1, 256>}, {transform_indices = @transform_3, window_bounds = array<i64: 32, 256>}]} {
    %c0 = arith.constant 0 : index
    %c0_0 = arith.constant 0 : index
    %0 = vector.load %arg1[%c0, %c0_0] : memref<32x128xbf16, #tpu.memory_space<vmem>>, vector<32x128xbf16>
    %c0_1 = arith.constant 0 : index
    %c0_2 = arith.constant 0 : index
    %1 = vector.load %arg2[%c0_1, %c0_2] : memref<128x256xbf16, #tpu.memory_space<vmem>>, vector<128x256xbf16>
    %cst = arith.constant dense<0.000000e+00> : vector<32x256xf32>
    %2 = tpu.matmul %0, %1, %cst {dimension_numbers = #tpu.dot_dimension_numbers<[1], [0], [0], [1], [0, 0, 1, 1], [], []>} : vector<32x128xbf16>, vector<128x256xbf16>, vector<32x256xf32> -> vector<32x256xf32>
    %c0_3 = arith.constant 0 : index
    %c0_4 = arith.constant 0 : index
    %3 = vector.load %arg3[%c0_3, %c0_4] : memref<1x256xf32, #tpu.memory_space<vmem>>, vector<1x256xf32>
    %4 = vector.broadcast %3 : vector<1x256xf32> to vector<32x256xf32>
    %5 = arith.addf %2, %4 : vector<32x256xf32>
    %cst_5 = arith.constant 0.000000e+00 : f32
    %6 = vector.broadcast %cst_5 : f32 to vector<32x256xf32>
    %7 = arith.maximumf %5, %6 : vector<32x256xf32>
    %8 = arith.truncf %7 : vector<32x256xf32> to vector<32x256xbf16>
    %c0_6 = arith.constant 0 : index
    %c0_7 = arith.constant 0 : index
    %9 = vector.load %arg4[%c0_6, %c0_7] : memref<32x256xbf16, #tpu.memory_space<vmem>>, vector<32x256xbf16>
    tpu.vector_store %arg4[%c0_6, %c0_7], %8 {strides = array<i32>} : memref<32x256xbf16, #tpu.memory_space<vmem>>, vector<32x256xbf16>,
    return
  }
  func.func @transform_0(%arg0: i32) -> (i32, i32) {
    %c0_i32 = arith.constant 0 : i32
    %c0_i32_0 = arith.constant 0 : i32
    return %arg0, %c0_i32 : i32, i32
  }
  func.func @transform_1(%arg0: i32) -> (i32, i32) {
    %c0_i32 = arith.constant 0 : i32
    %c0_i32_0 = arith.constant 0 : i32
    %c0_i32_1 = arith.constant 0 : i32
    return %c0_i32, %c0_i32_0 : i32, i32
  }
  func.func @transform_2(%arg0: i32) -> (i32, i32) {
    %c0_i32 = arith.constant 0 : i32
    %c0_i32_0 = arith.constant 0 : i32
    %c0_i32_1 = arith.constant 0 : i32
    return %c0_i32, %c0_i32_0 : i32, i32
  }
  func.func @transform_3(%arg0: i32) -> (i32, i32) {
    %c0_i32 = arith.constant 0 : i32
    %c0_i32_0 = arith.constant 0 : i32
    return %arg0, %c0_i32 : i32, i32
  }
}

</mosaic_0001>

<bundles_post_ra>
// kernel: tpu_custom_call.1
= control target key start
LH: loop header
LB: loop body
LE: loop exit
PB: predicated region body
PF: predicated region fallthrough
CT: control target
= control target key end

     0   :  { %8 = vsyncpa [#allocation3], 0  ;;  %s1030_s0 = inlined_call_operand.hbm [shape: bf16[96,128], index: 0, kind: input, shape index: {}]   ;;  %s1031_s1 = inlined_call_operand.hbm [shape: bf16[128,256], index: 1, kind: input, shape index: {}]   ;;  %s1032_s2 = inlined_call_operand.vmem [shape: f32[1,256], index: 2, kind: input, shape index: {}]   ;;  %s1033_s3 = inlined_call_operand.hbm [shape: bf16[96,256], index: 3, kind: output, shape index: {}]  }
   0x1   :  { %10 = vsyncpa [#allocation3 + $0x1], 0 }
   0x2   :  { %11 = vsyncpa [#allocation6], 0 }
   0x3   :  { %12 = vsyncpa [#allocation4], 0 }
   0x4   :  { %14 = vsyncpa [#allocation4 + $0x1], 0  ;;  %s830_s12 = smov 0   ;;  %s832_s13 = smov 0  }
   0x5   :  { %s834_s14 = smov 0   ;;  %s836_s15 = smov 0  }
   0x6 LB: > { %s851_s16 = sadd.s32 4294967295, %s798_s15   ;;  %s518_s17 = sadd.s32 4294967294, %s798_s15   ;;  %s798_s15 = sphi %s836_s15, %s1052_s15   ;;  %s794_s14 = sphi %s834_s14, %s1051_s14   ;;  %s790_s13 = sphi %s832_s13, %s1050_s13   ;;  %s786_s12 = sphi %s830_s12, %s1049_s12  }
   0x7   : > { %p40_p0 = scmp.ne.s32.totalorder %s790_s13, %s786_s12  ;;  %p1034_p1 = scmp.eq.s32.totalorder %s851_s16, 0 }
   0x8   : > { %p112_p3 = scmp.eq.s32.totalorder %s518_s17, 2  ;;  %p519_p5 = scmp.ge.s32.totalorder %s798_s15, 1 }
   0x9   : > { %p860_p4 = por %p1034_p1, %p40_p0  ;;  %p119_p7 = scmp.lt.s32.totalorder %s798_s15, 4 }
   0xa   : > { %p865_p6 = por %p112_p3, %p40_p0  ;;  %s800_s21 = smov [#allocation5]  }
   0xb   : > { %s1037_s18 = scalar_select %p860_p4, 1, 0 }
   0xc   : > { %s1038_s19 = scalar_select %p865_p6, 1, 0 }
   0xd   : > { %p870_p8 = pnand %p519_p5, %p119_p7  ;;  %s131_s22 = sshll.u32 %s800_s21, 4  ;;  %s132_s22 = int_to_ptr.vmem [resolvable:$true] %s131_s22 }
   0xe   : > { %s883_s24 = sadd.s32 1, %s798_s15   ;;  %s27_s25 = sadd.s32 1, %s794_s14 }
   0xf   : > { %s1039_s20 = scalar_select %p870_p8, 1, 0 }
  0x10   : > { %p588_p9 = pneg %p870_p8  ;;  %s24_s26 = ssub.s32 %s798_s15, %s883_s24 }
  0x11   : > { %s670_s29 = scalar_lea.hbm %s1031_s1, 2048 }
  0x12   : > { %p878_p10 = pnand %p588_p9, %p1034_p1  ;;  %p671_p11 = scmp.ne.s32.totalorder %s1031_s1, %s670_s29 }
  0x13   : > { %p677_p3 = scmp.lt.u32.totalorder %s670_s29, %s1031_s1 }
  0x14   : > { %p672_p12 = pneg %p878_p10 }
  0x16   : > { %p673_p13 = pnand %p672_p12, %p671_p11 }
  0x18   : > { %p674_p0 = pneg %p673_p13 }
  0x1a   : > { %p679_p5 = pnand %p677_p3, %p674_p0 }
  0x1c   : > { %682 = shalt.err (!%p679_p5)
}
  0x1d   : > { %s683_s7 = scalar_lea.vmem %s132_s22, 2048  ;;  %p691_p2 = scmp.lt.s32.totalorder %s132_s22, %s132_s22 }
  0x1e   : > { %p684_p7 = scmp.ne.s32.totalorder %s132_s22, %s683_s7  ;;  %p692_p6 = scmp.lt.s32.totalorder %s683_s7, %s683_s7 }
  0x20   : > { %p686_p9 = pnand %p684_p7, %p672_p12  ;;  %p693_p4 = por %p692_p6, %p691_p2 }
  0x22   : > { %p687_p1 = pneg %p686_p9 }
  0x24   : > { %p694_p8 = pnand %p693_p4, %p687_p1 }
  0x26   : > { %697 = shalt.err (!%p694_p8)
}
  0x27   : > { %s801_s8 = smov 128   ;;  %s802_s9 = smov 8  }
  0x28   : > { %591 = dma.hbm_to_vmem [thread:$0]  (!%p878_p10), %s1031_s1, 2048, %s132_s22, [#allocation6], %s801_s8, %s801_s8, %s802_s9  }
  0x29   : > { %p25_p11 = scmp.eq.s32.totalorder %s24_s26, 0  ;;  %p34_p2 = scmp.ne.s32.totalorder %s794_s14, %s790_s13 }
  0x2a   : > { %p35_p1 = scmp.eq.s32.totalorder %s798_s15, 0  ;;  %p601_p4 = scmp.lt.s32.totalorder %s798_s15, 3 }
  0x2b   : > { %s909_s17 = scalar_select %p25_p11, %s794_s14, %s27_s25  }
  0x2c   : > { %p36_p6 = por %p35_p1, %p34_p2  ;;  %p1041_p8 = scmp.eq.s32.totalorder %s851_s16, 2 }
  0x2d   : > { %s148_s27 = sand.u32 1, %s794_s14   ;;  %s557_s28 = sshll.u32 %s798_s15, 8 }
  0x2e   : > { %p913_p12 = por %p1041_p8, %p34_p2  ;;  %s522_s29 = sshll.u32 %s148_s27, 4 }
  0x2f   : > { %s922_s4 = scalar_lea.hbm %s1030_s0, %s557_s28  ;;  %s152_s22 = scalar_lea.vmem [#allocation2], %s522_s29 }
  0x30   : > { %s159_s25 = sshll.u32 %s152_s22, 4  ;;  %p924_p10 = pnand %p601_p4, %p36_p6  ;;  %s928_s25 = int_to_ptr.vmem [resolvable:$true] %s159_s25 }
  0x31   : > { %s930_s5 = scalar_lea.sflag [#allocation3], %s148_s27  ;;  %s698_s6 = scalar_lea.hbm %s922_s4, 256 }
  0x32   : > { %p699_p13 = scmp.ne.s32.totalorder %s922_s4, %s698_s6  ;;  %p700_p0 = pneg %p924_p10 }
  0x33   : > { %s703_s9 = scalar_lea.hbm %s1030_s0, 768  ;;  %p704_p7 = scmp.lt.u32.totalorder %s922_s4, %s1030_s0 }
  0x34   : > { %p701_p3 = pnand %p700_p0, %p699_p13  ;;  %p705_p9 = scmp.lt.u32.totalorder %s703_s9, %s698_s6 }
  0x35   : > { %p707_p2 = scmp.lt.u32.totalorder %s698_s6, %s922_s4 }
  0x36   : > { %p702_p5 = pneg %p701_p3  ;;  %p706_p11 = por %p705_p9, %p704_p7 }
  0x38   : > { %p708_p1 = por %p707_p2, %p706_p11 }
  0x3a   : > { %p709_p4 = pnand %p708_p1, %p702_p5 }
  0x3c   : > { %712 = shalt.err (!%p709_p4)
}
  0x3d   : > { %s713_s27 = scalar_lea.vmem %s928_s25, 256  ;;  %s803_s28 = smov [#allocation2]  }
  0x3e   : > { %p714_p6 = scmp.ne.s32.totalorder %s928_s25, %s713_s27  ;;  %s718_s29 = sshll.u32 %s803_s28, 4  ;;  %s719_s29 = int_to_ptr.vmem [resolvable:$false] %s718_s29 }
  0x3f   : > { %s720_s23 = scalar_lea.vmem %s719_s29, 512  ;;  %p721_p3 = scmp.lt.s32.totalorder %s928_s25, %s719_s29 }
  0x40   : > { %p716_p8 = pnand %p714_p6, %p700_p0  ;;  %p722_p7 = scmp.lt.s32.totalorder %s720_s23, %s713_s27 }
  0x42   : > { %p717_p13 = pneg %p716_p8  ;;  %p723_p9 = por %p722_p7, %p721_p3 }
  0x44   : > { %p724_p11 = pnand %p723_p9, %p717_p13 }
  0x46   : > { %727 = shalt.err (!%p724_p11)
}
  0x47   : > { %s804_s30 = smov 64   ;;  %s805_s22 = smov 4  }
  0x48   : > { %595 = dma.hbm_to_vmem [thread:$0]  (!%p924_p10), %s922_s4, 256, %s928_s25, %s930_s5, %s804_s30, %s804_s30, %s805_s22  }
  0x49   : > { %p1044_p0 = scmp.ne.s32.totalorder %s1039_s20, 0 }
  0x4a   : > { %s961_s6 = sand.u32 (!%p1044_p0), 1, %s790_s13   ;;  %p1045_p5 = scmp.ne.s32.totalorder (!%p1044_p0), %s1037_s18, 0 }
  0x4b   : > { %171 = sbr.rel (%p1044_p0) target bundleno = 356 (0x164), region = 32  ;;  %s526_s7 = sshll.u32 (!%p1044_p0), %s961_s6, 4 }
  0x4c   : > { %s174_s8 = scalar_lea.sflag (!%p1044_p0), [#allocation3], %s961_s6  ;;  %s965_s9 = scalar_lea.vmem (!%p1044_p0), [#allocation2], %s526_s7 }
  0x52   : > { %773 = dma.done.wait (%p1045_p5), %s174_s8, 256  }
  0x53   : > { %775 = vsyncadd (%p1045_p5), %s174_s8, 4294967040  ;;  %p1046_p10 = scmp.eq.s32.totalorder %s851_s16, 0 }
  0x55   : > { %777 = dma.done.wait (%p1046_p10), [#allocation6], 2048   ;;  %p1047_p2 = pmov %p1046_p10 }
  0x56   : > { %v806_v0 = vmov 0   ;;  %v644_v1 = vld [vmem:[#allocation5 + $0x4] ss:$8 sps:$4 sm:$0xff]   ;;  %v646_v2 = vld [vmem:[#allocation5] ss:$8 sps:$4 sm:$0xff]   ;;  %v229_v19 = vlaneseq  ;;  %s528_s4 = sshll.u32 %s961_s6, 5 }
  0x57   : > { %779 = vsyncadd (%p1047_p2), [#allocation6], 4294965248  ;;  %363 = vmatprep.mubr.bf16.mxu0 %v806_v0  ;;  %373 = vmatprep.mubr.bf16.mxu1 %v806_v0  ;;  %v647_v3 = vld [vmem:[#allocation5 + $0x14] ss:$8 sps:$4 sm:$0xff]   ;;  %v649_v4 = vld [vmem:[#allocation5 + $0x10] ss:$8 sps:$4 sm:$0xff]  }
  0x58   : > { %331 = vmatprep.subr.bf16.mxu0 %v644_v1  ;;  %564 = vmatprep.subr.bf16.mxu1 %v644_v1  ;;  %v650_v5 = vld [vmem:[#allocation5 + $0x24] ss:$8 sps:$4 sm:$0xff]   ;;  %v652_v6 = vld [vmem:[#allocation5 + $0x20] ss:$8 sps:$4 sm:$0xff]   ;;  %v653_v7 = vld [vmem:[#allocation5 + $0x34] ss:$8 sps:$4 sm:$0xff]  }
  0x59   : > { %332 = vmatpush1.bf16.msra.mxu0 %v646_v2  ;;  %572 = vmatpush1.bf16.msra.mxu1 %v646_v2  ;;  %v655_v8 = vld [vmem:[#allocation5 + $0x30] ss:$8 sps:$4 sm:$0xff]   ;;  %v656_v9 = vld [vmem:[#allocation5 + $0x44] ss:$8 sps:$4 sm:$0xff]   ;;  %v658_v10 = vld [vmem:[#allocation5 + $0x40] ss:$8 sps:$4 sm:$0xff]  }
  0x5a   : > { %333 = vmatprep.subr.bf16.mxu0 %v647_v3  ;;  %565 = vmatprep.subr.bf16.mxu1 %v647_v3  ;;  %v659_v11 = vld [vmem:[#allocation5 + $0x54] ss:$8 sps:$4 sm:$0xff]   ;;  %v661_v12 = vld [vmem:[#allocation5 + $0x50] ss:$8 sps:$4 sm:$0xff]   ;;  %v662_v13 = vld [vmem:[#allocation5 + $0x64] ss:$8 sps:$4 sm:$0xff]  }
  0x5b   : > { %v664_v14 = vld [vmem:[#allocation5 + $0x60] ss:$8 sps:$4 sm:$0xff]   ;;  %v665_v15 = vld [vmem:[#allocation5 + $0x74] ss:$8 sps:$4 sm:$0xff]   ;;  %v667_v16 = vld [vmem:[#allocation5 + $0x70] ss:$8 sps:$4 sm:$0xff]  }
  0x5c   : > { %v668_v17 = vld [vmem:[%s965_s9] sm:$0xff]   ;;  %v669_v18 = vld [vmem:[%s965_s9 + $0x8] sm:$0xff]   ;;  %v230_v20 = vshrl.u32 %v229_v19, 7  ;;  %s203_s25 = scalar_lea.vmem [#allocation7], %s528_s4  ;;  %s563_s5 = sshll.u32 %s851_s16, 9 }
  0x5d   : > { %334 = vmatpush1.bf16.msra.mxu0 %v649_v4  ;;  %573 = vmatpush1.bf16.msra.mxu1 %v649_v4  ;;  %v227_v22 = vld [vmem:[%s1032_s2] sm:$0x3]  ;;  %s435_s26 = sshll.u32 %s203_s25, 4  ;;  %s987_s27 = scalar_lea.hbm %s1033_s3, %s563_s5  ;;  %s982_s26 = int_to_ptr.vmem [resolvable:$true] %s435_s26 }
  0x5e   : > { %335 = vmatprep.subr.bf16.mxu0 %v650_v5  ;;  %566 = vmatprep.subr.bf16.mxu1 %v650_v5  ;;  %v231_v21 = vsub.s32 0, %v230_v20  ;;  %v235_v23 = vsub.s32 1, %v230_v20  ;;  %s421_s16 = scalar_lea.sflag [#allocation4], %s961_s6  ;;  %s728_s28 = scalar_lea.vmem %s982_s26, 512 }
  0x5f   : > { %p729_p1 = scmp.ne.s32.totalorder %s982_s26, %s728_s28  ;;  %s807_s29 = smov [#allocation7]  }
  0x60   : > { %v232_v24 = vrot.slane %v227_v22, %v231_v21  ;;  %v236_v25 = vrot.slane %v227_v22, %v235_v23  ;;  %s732_s23 = sshll.u32 %s807_s29, 4  ;;  %s733_s23 = int_to_ptr.vmem [resolvable:$false] %s732_s23 }
  0x61   : > { %336 = vmatpush1.bf16.msra.mxu0 %v652_v6  ;;  %574 = vmatpush1.bf16.msra.mxu1 %v652_v6  ;;  %p730_p4 = pnand %p729_p1, %p913_p12  ;;  %s734_s30 = scalar_lea.vmem %s733_s23, 1024 }
  0x62   : > { %337 = vmatprep.subr.bf16.mxu0 %v653_v7  ;;  %567 = vmatprep.subr.bf16.mxu1 %v653_v7  ;;  %p735_p8 = scmp.lt.s32.totalorder %s982_s26, %s733_s23  ;;  %p736_p13 = scmp.lt.s32.totalorder %s734_s30, %s728_s28 }
  0x63   : > { %p731_p6 = pneg %p730_p4 }
  0x64   : > { %p737_p3 = por %p736_p13, %p735_p8 }
  0x65   : > { %338 = vmatpush1.bf16.msra.mxu0 %v655_v8  ;;  %575 = vmatpush1.bf16.msra.mxu1 %v655_v8 }
  0x66   : > { %339 = vmatprep.subr.bf16.mxu0 %v656_v9  ;;  %568 = vmatprep.subr.bf16.mxu1 %v656_v9  ;;  %p738_p7 = pnand %p737_p3, %p731_p6 }
  0x69   : > { %340 = vmatpush1.bf16.msra.mxu0 %v658_v10  ;;  %576 = vmatpush1.bf16.msra.mxu1 %v658_v10 }
  0x6a   : > { %341 = vmatprep.subr.bf16.mxu0 %v659_v11  ;;  %569 = vmatprep.subr.bf16.mxu1 %v659_v11 }
  0x6d   : > { %342 = vmatpush1.bf16.msra.mxu0 %v661_v12  ;;  %577 = vmatpush1.bf16.msra.mxu1 %v661_v12 }
  0x6e   : > { %343 = vmatprep.subr.bf16.mxu0 %v662_v13  ;;  %570 = vmatprep.subr.bf16.mxu1 %v662_v13 }
  0x71   : > { %344 = vmatpush1.bf16.msra.mxu0 %v664_v14  ;;  %578 = vmatpush1.bf16.msra.mxu1 %v664_v14 }
  0x72   : > { %345 = vmatprep.subr.bf16.mxu0 %v665_v15  ;;  %571 = vmatprep.subr.bf16.mxu1 %v665_v15 }
  0x75   : > { %346 = vmatpush1.bf16.msra.mxu0 %v667_v16  ;;  %579 = vmatpush1.bf16.msra.mxu1 %v667_v16 }
  0x78   : > { %364 = vmatmul.mubr.bf16.vlgmr.msra.gmra.mrb[0].mxu0 %v668_v17  ;;  %374 = vmatmul.mubr.bf16.vlgmr.msra.gmra.mrb[0].mxu1 %v669_v18 }
 0x14b   : > { %v365_v26 = vpop.f32.mrb[0].mxu0  ;;  %v375_v27 = vpop.f32.mrb[0].mxu1 }
 0x14c   : > { %v366_v28 = vadd.f32 %v365_v26, %v232_v24  ;;  %v376_v29 = vadd.f32 %v375_v27, %v232_v24  ;;  %v367_v30 = vpop.f32.mrb[1].mxu0  ;;  %v377_v31 = vpop.f32.mrb[1].mxu1 }
 0x14d   : > { %v368_v32 = vadd.f32 %v367_v30, %v236_v25  ;;  %v378_v33 = vadd.f32 %v377_v31, %v236_v25  ;;  %v369_v34 = vpop.f32.mrb[2].mxu0  ;;  %v379_v35 = vpop.f32.mrb[2].mxu1 }
 0x14e   : > { %v384_v36 = vmax.f32 %v366_v28, 0.0  ;;  %v388_v37 = vmax.f32 %v376_v29, 0.0  ;;  %v370_v38 = vadd.f32 %v369_v34, %v232_v24  ;;  %v380_v39 = vadd.f32 %v379_v35, %v232_v24  ;;  %v371_v40 = vpop.f32.mrb[3].mxu0  ;;  %v381_v41 = vpop.f32.mrb[3].mxu1 }
 0x14f   : > { %v385_v42 = vmax.f32 %v368_v32, 0.0  ;;  %v389_v43 = vmax.f32 %v378_v33, 0.0  ;;  %v372_v44 = vadd.f32 %v371_v40, %v236_v25  ;;  %v382_v45 = vadd.f32 %v381_v41, %v236_v25 }
 0x150   : > { %v386_v46 = vmax.f32 %v370_v38, 0.0  ;;  %v390_v47 = vmax.f32 %v380_v39, 0.0 }
 0x151   : > { %v558_v48 = vpack.c.bf16 %v385_v42, %v384_v36  ;;  %v560_v49 = vpack.c.bf16 %v389_v43, %v388_v37  ;;  %v387_v50 = vmax.f32 %v372_v44, 0.0  ;;  %v391_v51 = vmax.f32 %v382_v45, 0.0 }
 0x153   : > { %416 = vst [vmem:[%s203_s25] sm:$0xff] %v558_v48  ;;  %418 = vst [vmem:[%s203_s25 + $0x10] sm:$0xff] %v560_v49  ;;  %v559_v52 = vpack.c.bf16 %v387_v50, %v386_v46  ;;  %v561_v53 = vpack.c.bf16 %v391_v51, %v390_v47 }
 0x155   : > { %417 = vst [vmem:[%s203_s25 + $0x8] sm:$0xff] %v559_v52  ;;  %419 = vst [vmem:[%s203_s25 + $0x18] sm:$0xff] %v561_v53 }
 0x156   : > { %741 = shalt.err (!%p738_p7)
}
 0x157   : > { %s742_s22 = scalar_lea.hbm %s987_s27, 512  ;;  %s746_s9 = scalar_lea.hbm %s1033_s3, 1536 }
 0x158   : > { %p743_p9 = scmp.ne.s32.totalorder %s987_s27, %s742_s22  ;;  %p747_p5 = scmp.lt.u32.totalorder %s987_s27, %s1033_s3 }
 0x159   : > { %p748_p10 = scmp.lt.u32.totalorder %s746_s9, %s742_s22  ;;  %p750_p1 = scmp.lt.u32.totalorder %s742_s22, %s987_s27 }
 0x15a   : > { %p744_p11 = pnand %p743_p9, %p913_p12 }
 0x15b   : > { %p749_p2 = por %p748_p10, %p747_p5 }
 0x15c   : > { %p745_p0 = pneg %p744_p11 }
 0x15d   : > { %p751_p4 = por %p750_p1, %p749_p2 }
 0x15f   : > { %p752_p6 = pnand %p751_p4, %p745_p0 }
 0x161   : > { %755 = shalt.err (!%p752_p6)
}
 0x162   : > { %s808_s4 = smov 128   ;;  %s809_s25 = smov 8  }
 0x163   : > { %586 = dma.vmem_to_hbm [thread:$0]  (%p913_p12), %s982_s26, 512, %s987_s27, %s421_s16, %s808_s4, %s808_s4, %s809_s25  }
 0x164 PF: > { %p603_p8 = scmp.ge.s32.totalorder %s798_s15, 2  ;;  %s450_s5 = sand.u32 1, %s786_s12  }
 0x165   : > { %p1048_p13 = scmp.ne.s32.totalorder %s1038_s19, 0  ;;  %s451_s10 = scalar_lea.sflag [#allocation4], %s450_s5 }
 0x167   : > { %p597_p3 = pnand %p603_p8, %p1048_p13 }
 0x169   : > { %781 = dma.done.wait (!%p597_p3), %s451_s10, 512  }
 0x16a   : > { %783 = vsyncadd (!%p597_p3), %s451_s10, 4294966784  ;;  %p17_p7 = scmp.ge.s32.totalorder %s883_s24, 5   ;;  %s1049_s12 = smov %s790_s13 }
 0x16b   : > { %s1050_s13 = smov %s794_s14  ;;  %s1051_s14 = smov %s909_s17 }
 0x16c   : > { %s1052_s15 = smov %s883_s24  ;;  %19 = sbr.rel (!%p17_p7) target bundleno = 6 (0x6), region = 81 }
 0x173   :  { %456 = vsyncpa [#allocation3], 1 }
 0x174   :  { %458 = vsyncpa [#allocation3 + $0x1], 1 }
 0x175   :  { %459 = vsyncpa [#allocation6], 1 }
 0x176   :  { %460 = vsyncpa [#allocation4], 1 }
 0x177   :  { %462 = vsyncpa [#allocation4 + $0x1], 1 }

</bundles_post_ra>
